<compile_context>
chip_gen: v7x
topology: tpu7x:2x2x1
jax: 0.10.0
libtpu: 0.0.40
codegen_flags: <defaults>
</compile_context>

<pallas_src>
import jax
import jax.numpy as jnp
from jax import lax
from jax.experimental import pallas as pl
from jax.experimental.pallas import tpu as pltpu

HIDDEN = 64
OUT = 5
FC_PAD = 128              # lane-dense padded output width for the final Linear
GATES = 4 * HIDDEN        # 256


def _round_up(a, m):
    return (a + m - 1) // m * m


def _make_kernel(t_true, t_chunk, unroll):
    """Builds the per-(batch-block, T-chunk) kernel with static shape params."""
    H = HIDDEN
    needs_mask = (t_true % t_chunk) != 0

    def kernel(xproj_ref, whh_ref, wfc_ref, bfc_ref, out_ref, h_ref, c_ref):
        # xproj_ref : (t_chunk, TB, 4H) f32   hoisted input projection chunk
        # whh_ref   : (H, 4H)           bf16  fused recurrent weight (i|f|o|g)
        # wfc_ref   : (H, FC_PAD)       f32   padded FC weight
        # bfc_ref   : (1, FC_PAD)       f32   padded FC bias
        # out_ref   : (TB, FC_PAD)      f32   lane-dense output block
        # h_ref/c_ref: (TB, H)          f32   state carried across T-chunks
        j = pl.program_id(1)

        @pl.when(j == 0)
        def _():
            h_ref[...] = jnp.zeros_like(h_ref)
            c_ref[...] = jnp.zeros_like(c_ref)

        whh = whh_ref[...]                       # (H, 4H) bf16, hoisted

        def step(t, carry):
            h, c = carry
            # One fused (TB,H)@(H,4H) bf16 MXU matmul per step, f32 accum.
            pre = xproj_ref[t] + jnp.dot(h.astype(whh.dtype), whh,
                                         preferred_element_type=jnp.float32)
            sig = jax.nn.sigmoid(pre[:, :3 * H])     # i|f|o contiguous
            g = jnp.tanh(pre[:, 3 * H:])             # g
            c_new = sig[:, H:2 * H] * c + sig[:, :H] * g
            h_new = sig[:, 2 * H:3 * H] * jnp.tanh(c_new)
            if needs_mask:
                keep = (j * t_chunk + t) < t_true    # ignore padded timesteps
                h_new = jnp.where(keep, h_new, h)
                c_new = jnp.where(keep, c_new, c)
            return h_new, c_new

        h, c = lax.fori_loop(0, t_chunk, step, (h_ref[...], c_ref[...]),
                             unroll=unroll)
        h_ref[...] = h
        c_ref[...] = c

        @pl.when(j == pl.num_programs(1) - 1)
        def _():
            # Final Linear on the last hidden state; lane-dense (TB,128) store.
            out_ref[...] = (jnp.dot(h, wfc_ref[...],
                                    preferred_element_type=jnp.float32)
                            + bfc_ref[...])

    return kernel


def vix_lstm_forward(x_bt, whh_f, wih_f, b_f, wfc_pad, bfc_pad):
    """x_bt: (B, T) float32 (input_size==1 already squeezed). Returns (B, 5)."""
    B, T = x_bt.shape

    # ---- Batch tiling: >=2 blocks when B >= 16 (v7x second TC), cap at 128.
    B8 = _round_up(B, 8)
    if B8 <= 8:
        block_b = B8
    else:
        block_b = min(128, _round_up(pl.cdiv(B8, 2), 8))
    B_pad = _round_up(B8, block_b)
    grid_b = B_pad // block_b

    # ---- T chunking: bound the streamed xproj block regardless of T.
    t_chunk = min(T, 32)
    grid_t = pl.cdiv(T, t_chunk)
    T_pad = grid_t * t_chunk

    # ---- Hoisted, vectorized input projection (off the serial path; its
    # HBM->VMEM DMA is hidden under the recurrence by the pipeline).
    # xproj[t, b, :] = x[b, t] * wih + (b_ih + b_hh)   (gate order i|f|o|g)
    xproj = (x_bt.T[:, :, None] * wih_f.reshape(GATES)
             + b_f.reshape(GATES)).astype(jnp.float32)          # (T, B, 4H)
    xproj = jnp.pad(xproj, ((0, T_pad - T), (0, B_pad - B), (0, 0)))

    whh_bf16 = whh_f.astype(jnp.bfloat16)        # bf16 MXU operands, f32 accum

    # fori unroll tied to batch tile to avoid vreg spills on the serial path.
    if t_chunk <= 8:
        unroll = True
    elif block_b <= 32:
        unroll = 8
    else:
        unroll = 2

    kernel = _make_kernel(T, t_chunk, unroll)

    out_pad = pl.pallas_call(
        kernel,
        out_shape=jax.ShapeDtypeStruct((B_pad, FC_PAD), jnp.float32),
        grid_spec=pltpu.PrefetchScalarGridSpec(
            num_scalar_prefetch=0,
            grid=(grid_b, grid_t),
            in_specs=[
                pl.BlockSpec((t_chunk, block_b, GATES),
                             lambda i, j: (j, i, 0)),            # xproj chunk
                pl.BlockSpec((HIDDEN, GATES), lambda i, j: (0, 0)),   # Whh
                pl.BlockSpec((HIDDEN, FC_PAD), lambda i, j: (0, 0)),  # Wfc
                pl.BlockSpec((1, FC_PAD), lambda i, j: (0, 0)),       # bfc
            ],
            out_specs=pl.BlockSpec((block_b, FC_PAD), lambda i, j: (i, 0)),
            scratch_shapes=[
                pltpu.VMEM((block_b, HIDDEN), jnp.float32),      # h carry
                pltpu.VMEM((block_b, HIDDEN), jnp.float32),      # c carry
            ],
        ),
        compiler_params=pltpu.CompilerParams(
            dimension_semantics=("parallel", "arbitrary"),
            vmem_limit_bytes=32 * 1024 * 1024,
        ),
    )(xproj, whh_bf16, wfc_pad, bfc_pad)
    return out_pad[:B, :OUT]


def init_params(key):
    """PyTorch-style init; returns (raw PyTorch-layout params, fused kernel params)."""
    H = HIDDEN
    k = 1.0 / jnp.sqrt(jnp.float32(H))
    ks = jax.random.split(key, 6)
    w_ih = jax.random.uniform(ks[0], (4 * H, 1), jnp.float32, -k, k)
    w_hh = jax.random.uniform(ks[1], (4 * H, H), jnp.float32, -k, k)
    b_ih = jax.random.uniform(ks[2], (4 * H,), jnp.float32, -k, k)
    b_hh = jax.random.uniform(ks[3], (4 * H,), jnp.float32, -k, k)
    w_fc = jax.random.uniform(ks[4], (OUT, H), jnp.float32, -k, k)
    b_fc = jax.random.uniform(ks[5], (OUT,), jnp.float32, -k, k)
    raw = (w_ih, w_hh, b_ih, b_hh, w_fc, b_fc)

    # Reorder PyTorch gate rows i,f,g,o -> i,f,o,g (contiguous sigmoid block).
    def reorder(w):
        return jnp.concatenate([w[0:H], w[H:2 * H], w[3 * H:4 * H],
                                w[2 * H:3 * H]], axis=0)

    whh_f = reorder(w_hh).T                              # (H, 4H)
    wih_f = reorder(w_ih).T                              # (1, 4H)
    b_f = reorder((b_ih + b_hh)[:, None]).reshape(1, GATES)
    wfc_pad = jnp.zeros((H, FC_PAD), jnp.float32).at[:, :OUT].set(w_fc.T)
    bfc_pad = jnp.zeros((1, FC_PAD), jnp.float32).at[:, :OUT].set(b_fc)
    fused = (whh_f, wih_f, b_f, wfc_pad, bfc_pad)
    return raw, fused


def reference_forward(x_bt, raw):
    """Pure-JAX f32 reference with exact PyTorch LSTM semantics/layout."""
    w_ih, w_hh, b_ih, b_hh, w_fc, b_fc = raw
    B, T = x_bt.shape
    H = HIDDEN
    h = jnp.zeros((B, H), jnp.float32)
    c = jnp.zeros((B, H), jnp.float32)
    for t in range(T):
        pre = x_bt[:, t:t + 1] @ w_ih.T + b_ih + h @ w_hh.T + b_hh
        i = jax.nn.sigmoid(pre[:, 0:H])
        f = jax.nn.sigmoid(pre[:, H:2 * H])
        g = jnp.tanh(pre[:, 2 * H:3 * H])
        o = jax.nn.sigmoid(pre[:, 3 * H:4 * H])
        c = f * c + i * g
        h = o * jnp.tanh(c)
    return h @ w_fc.T + b_fc


if __name__ == "__main__":
    B, T = 8, 8  # small shapes consistent with the module: x is (B, T, 1)
    key = jax.random.PRNGKey(0)
    kx, kp = jax.random.split(key)

    x = jax.random.normal(kx, (B, T, 1), jnp.float32)  # PyTorch-style input
    raw, fused = init_params(kp)

    x_bt = x[..., 0]  # (B, T)  -- input_size == 1 squeezed
    out = vix_lstm_forward(x_bt, *fused)
    out = jax.block_until_ready(out)

    ref = reference_forward(x_bt, raw)
    assert out.shape == (B, OUT)
    err = jnp.max(jnp.abs(out - ref))
    # Tolerance loosened vs. the f32 reference because the recurrent matmul
    # uses bf16 operands (f32 accumulation) for MXU throughput.
    assert jnp.allclose(out, ref, atol=3e-2, rtol=3e-2), (
        f"mismatch: max abs err {err}")

    print("KERNEL_OK")
</pallas_src>

<mosaic_0001>
module attributes {stable_mosaic.version = 11 : i64} {
  func.func @kernel(%arg0: i32, %arg1: i32, %arg2: memref<8x8x256xf32, #tpu.memory_space<vmem>>, %arg3: memref<64x256xbf16, #tpu.memory_space<vmem>>, %arg4: memref<64x128xf32, #tpu.memory_space<vmem>>, %arg5: memref<1x128xf32, #tpu.memory_space<vmem>>, %arg6: memref<8x128xf32, #tpu.memory_space<vmem>>, %arg7: memref<8x64xf32, #tpu.memory_space<vmem>>, %arg8: memref<8x64xf32, #tpu.memory_space<vmem>>) attributes {dimension_semantics = [#tpu.dimension_semantics<parallel>, #tpu.dimension_semantics<arbitrary>], iteration_bounds = array<i64: 1, 1>, scalar_prefetch = 0 : i64, scratch_operands = 2 : i64, tpu.core_type = #tpu.core_type<tc>, window_params = [{transform_indices = @transform_0, window_bounds = array<i64: 8, 8, 256>}, {pipeline_mode = #tpu.pipeline_mode<synchronous>, transform_indices = @transform_1, window_bounds = array<i64: 64, 256>}, {pipeline_mode = #tpu.pipeline_mode<synchronous>, transform_indices = @transform_2, window_bounds = array<i64: 64, 128>}, {pipeline_mode = #tpu.pipeline_mode<synchronous>, transform_indices = @transform_3, window_bounds = array<i64: 1, 128>}, {transform_indices = @transform_4, window_bounds = array<i64: 8, 128>}]} {
    %c0_i32 = arith.constant 0 : i32
    %0 = arith.cmpi eq, %arg1, %c0_i32 : i32
    %1 = arith.extui %0 : i1 to i32
    %c0_i32_0 = arith.constant 0 : i32
    %2 = arith.cmpi ne, %1, %c0_i32_0 : i32
    scf.if %2 {
      %cst_44 = arith.constant 0.000000e+00 : f32
      %187 = vector.broadcast %cst_44 : f32 to vector<8x64xf32>
      %c0_45 = arith.constant 0 : index
      %c0_46 = arith.constant 0 : index
      %188 = vector.load %arg7[%c0_45, %c0_46] : memref<8x64xf32, #tpu.memory_space<vmem>>, vector<8x64xf32>
      tpu.vector_store %arg7[%c0_45, %c0_46], %187 {strides = array<i32>} : memref<8x64xf32, #tpu.memory_space<vmem>>, vector<8x64xf32>,
      %cst_47 = arith.constant 0.000000e+00 : f32
      %189 = vector.broadcast %cst_47 : f32 to vector<8x64xf32>
      %c0_48 = arith.constant 0 : index
      %c0_49 = arith.constant 0 : index
      %190 = vector.load %arg8[%c0_48, %c0_49] : memref<8x64xf32, #tpu.memory_space<vmem>>, vector<8x64xf32>
      tpu.vector_store %arg8[%c0_48, %c0_49], %189 {strides = array<i32>} : memref<8x64xf32, #tpu.memory_space<vmem>>, vector<8x64xf32>,
    } else {
    }
    %c0 = arith.constant 0 : index
    %c0_1 = arith.constant 0 : index
    %3 = vector.load %arg3[%c0, %c0_1] : memref<64x256xbf16, #tpu.memory_space<vmem>>, vector<64x256xbf16>
    %c0_2 = arith.constant 0 : index
    %c0_3 = arith.constant 0 : index
    %4 = vector.load %arg7[%c0_2, %c0_3] : memref<8x64xf32, #tpu.memory_space<vmem>>, vector<8x64xf32>
    %c0_4 = arith.constant 0 : index
    %c0_5 = arith.constant 0 : index
    %5 = vector.load %arg8[%c0_4, %c0_5] : memref<8x64xf32, #tpu.memory_space<vmem>>, vector<8x64xf32>
    %c0_i32_6 = arith.constant 0 : i32
    %6 = arith.index_cast %c0_i32_6 : i32 to index
    %c0_7 = arith.constant 0 : index
    %c0_8 = arith.constant 0 : index
    %7 = vector.load %arg2[%6, %c0_7, %c0_8] : memref<8x8x256xf32, #tpu.memory_space<vmem>>, vector<1x8x256xf32>
    %8 = vector.shape_cast %7 : vector<1x8x256xf32> to vector<8x256xf32>
    %9 = arith.truncf %4 : vector<8x64xf32> to vector<8x64xbf16>
    %cst = arith.constant dense<0.000000e+00> : vector<8x256xf32>
    %10 = tpu.matmul %9, %3, %cst {dimension_numbers = #tpu.dot_dimension_numbers<[1], [0], [0], [1], [0, 0, 1, 1], [], []>} : vector<8x64xbf16>, vector<64x256xbf16>, vector<8x256xf32> -> vector<8x256xf32>
    %11 = arith.addf %8, %10 : vector<8x256xf32>
    %12 = vector.extract_strided_slice %11 {offsets = [0, 0], sizes = [8, 192], strides = [1, 1]} : vector<8x256xf32> to vector<8x192xf32>
    %13 = arith.negf %12 : vector<8x192xf32>
    %14 = math.exp %13 : vector<8x192xf32>
    %cst_9 = arith.constant 1.000000e+00 : f32
    %15 = vector.broadcast %cst_9 : f32 to vector<8x192xf32>
    %16 = arith.addf %15, %14 : vector<8x192xf32>
    %17 = arith.divf %15, %16 : vector<8x192xf32>
    %18 = vector.extract_strided_slice %11 {offsets = [0, 192], sizes = [8, 64], strides = [1, 1]} : vector<8x256xf32> to vector<8x64xf32>
    %19 = math.tanh %18 : vector<8x64xf32>
    %20 = vector.extract_strided_slice %17 {offsets = [0, 64], sizes = [8, 64], strides = [1, 1]} : vector<8x192xf32> to vector<8x64xf32>
    %21 = arith.mulf %20, %5 : vector<8x64xf32>
    %22 = vector.extract_strided_slice %17 {offsets = [0, 0], sizes = [8, 64], strides = [1, 1]} : vector<8x192xf32> to vector<8x64xf32>
    %23 = arith.mulf %22, %19 : vector<8x64xf32>
    %24 = arith.addf %21, %23 : vector<8x64xf32>
    %25 = vector.extract_strided_slice %17 {offsets = [0, 128], sizes = [8, 64], strides = [1, 1]} : vector<8x192xf32> to vector<8x64xf32>
    %26 = math.tanh %24 : vector<8x64xf32>
    %27 = arith.mulf %25, %26 : vector<8x64xf32>
    %c1_i32 = arith.constant 1 : i32
    %28 = arith.index_cast %c1_i32 : i32 to index
    %c0_10 = arith.constant 0 : index
    %c0_11 = arith.constant 0 : index
    %29 = vector.load %arg2[%28, %c0_10, %c0_11] : memref<8x8x256xf32, #tpu.memory_space<vmem>>, vector<1x8x256xf32>
    %30 = vector.shape_cast %29 : vector<1x8x256xf32> to vector<8x256xf32>
    %31 = arith.truncf %27 : vector<8x64xf32> to vector<8x64xbf16>
    %cst_12 = arith.constant dense<0.000000e+00> : vector<8x256xf32>
    %32 = tpu.matmul %31, %3, %cst_12 {dimension_numbers = #tpu.dot_dimension_numbers<[1], [0], [0], [1], [0, 0, 1, 1], [], []>} : vector<8x64xbf16>, vector<64x256xbf16>, vector<8x256xf32> -> vector<8x256xf32>
    %33 = arith.addf %30, %32 : vector<8x256xf32>
    %34 = vector.extract_strided_slice %33 {offsets = [0, 0], sizes = [8, 192], strides = [1, 1]} : vector<8x256xf32> to vector<8x192xf32>
    %35 = arith.negf %34 : vector<8x192xf32>
    %36 = math.exp %35 : vector<8x192xf32>
    %cst_13 = arith.constant 1.000000e+00 : f32
    %37 = vector.broadcast %cst_13 : f32 to vector<8x192xf32>
    %38 = arith.addf %37, %36 : vector<8x192xf32>
    %39 = arith.divf %37, %38 : vector<8x192xf32>
    %40 = vector.extract_strided_slice %33 {offsets = [0, 192], sizes = [8, 64], strides = [1, 1]} : vector<8x256xf32> to vector<8x64xf32>
    %41 = math.tanh %40 : vector<8x64xf32>
    %42 = vector.extract_strided_slice %39 {offsets = [0, 64], sizes = [8, 64], strides = [1, 1]} : vector<8x192xf32> to vector<8x64xf32>
    %43 = arith.mulf %42, %24 : vector<8x64xf32>
    %44 = vector.extract_strided_slice %39 {offsets = [0, 0], sizes = [8, 64], strides = [1, 1]} : vector<8x192xf32> to vector<8x64xf32>
    %45 = arith.mulf %44, %41 : vector<8x64xf32>
    %46 = arith.addf %43, %45 : vector<8x64xf32>
    %47 = vector.extract_strided_slice %39 {offsets = [0, 128], sizes = [8, 64], strides = [1, 1]} : vector<8x192xf32> to vector<8x64xf32>
    %48 = math.tanh %46 : vector<8x64xf32>
    %49 = arith.mulf %47, %48 : vector<8x64xf32>
    %c2_i32 = arith.constant 2 : i32
    %50 = arith.index_cast %c2_i32 : i32 to index
    %c0_14 = arith.constant 0 : index
    %c0_15 = arith.constant 0 : index
    %51 = vector.load %arg2[%50, %c0_14, %c0_15] : memref<8x8x256xf32, #tpu.memory_space<vmem>>, vector<1x8x256xf32>
    %52 = vector.shape_cast %51 : vector<1x8x256xf32> to vector<8x256xf32>
    %53 = arith.truncf %49 : vector<8x64xf32> to vector<8x64xbf16>
    %cst_16 = arith.constant dense<0.000000e+00> : vector<8x256xf32>
    %54 = tpu.matmul %53, %3, %cst_16 {dimension_numbers = #tpu.dot_dimension_numbers<[1], [0], [0], [1], [0, 0, 1, 1], [], []>} : vector<8x64xbf16>, vector<64x256xbf16>, vector<8x256xf32> -> vector<8x256xf32>
    %55 = arith.addf %52, %54 : vector<8x256xf32>
    %56 = vector.extract_strided_slice %55 {offsets = [0, 0], sizes = [8, 192], strides = [1, 1]} : vector<8x256xf32> to vector<8x192xf32>
    %57 = arith.negf %56 : vector<8x192xf32>
    %58 = math.exp %57 : vector<8x192xf32>
    %cst_17 = arith.constant 1.000000e+00 : f32
    %59 = vector.broadcast %cst_17 : f32 to vector<8x192xf32>
    %60 = arith.addf %59, %58 : vector<8x192xf32>
    %61 = arith.divf %59, %60 : vector<8x192xf32>
    %62 = vector.extract_strided_slice %55 {offsets = [0, 192], sizes = [8, 64], strides = [1, 1]} : vector<8x256xf32> to vector<8x64xf32>
    %63 = math.tanh %62 : vector<8x64xf32>
    %64 = vector.extract_strided_slice %61 {offsets = [0, 64], sizes = [8, 64], strides = [1, 1]} : vector<8x192xf32> to vector<8x64xf32>
    %65 = arith.mulf %64, %46 : vector<8x64xf32>
    %66 = vector.extract_strided_slice %61 {offsets = [0, 0], sizes = [8, 64], strides = [1, 1]} : vector<8x192xf32> to vector<8x64xf32>
    %67 = arith.mulf %66, %63 : vector<8x64xf32>
    %68 = arith.addf %65, %67 : vector<8x64xf32>
    %69 = vector.extract_strided_slice %61 {offsets = [0, 128], sizes = [8, 64], strides = [1, 1]} : vector<8x192xf32> to vector<8x64xf32>
    %70 = math.tanh %68 : vector<8x64xf32>
    %71 = arith.mulf %69, %70 : vector<8x64xf32>
    %c3_i32 = arith.constant 3 : i32
    %72 = arith.index_cast %c3_i32 : i32 to index
    %c0_18 = arith.constant 0 : index
    %c0_19 = arith.constant 0 : index
    %73 = vector.load %arg2[%72, %c0_18, %c0_19] : memref<8x8x256xf32, #tpu.memory_space<vmem>>, vector<1x8x256xf32>
    %74 = vector.shape_cast %73 : vector<1x8x256xf32> to vector<8x256xf32>
    %75 = arith.truncf %71 : vector<8x64xf32> to vector<8x64xbf16>
    %cst_20 = arith.constant dense<0.000000e+00> : vector<8x256xf32>
    %76 = tpu.matmul %75, %3, %cst_20 {dimension_numbers = #tpu.dot_dimension_numbers<[1], [0], [0], [1], [0, 0, 1, 1], [], []>} : vector<8x64xbf16>, vector<64x256xbf16>, vector<8x256xf32> -> vector<8x256xf32>
    %77 = arith.addf %74, %76 : vector<8x256xf32>
    %78 = vector.extract_strided_slice %77 {offsets = [0, 0], sizes = [8, 192], strides = [1, 1]} : vector<8x256xf32> to vector<8x192xf32>
    %79 = arith.negf %78 : vector<8x192xf32>
    %80 = math.exp %79 : vector<8x192xf32>
    %cst_21 = arith.constant 1.000000e+00 : f32
    %81 = vector.broadcast %cst_21 : f32 to vector<8x192xf32>
    %82 = arith.addf %81, %80 : vector<8x192xf32>
    %83 = arith.divf %81, %82 : vector<8x192xf32>
    %84 = vector.extract_strided_slice %77 {offsets = [0, 192], sizes = [8, 64], strides = [1, 1]} : vector<8x256xf32> to vector<8x64xf32>
    %85 = math.tanh %84 : vector<8x64xf32>
    %86 = vector.extract_strided_slice %83 {offsets = [0, 64], sizes = [8, 64], strides = [1, 1]} : vector<8x192xf32> to vector<8x64xf32>
    %87 = arith.mulf %86, %68 : vector<8x64xf32>
    %88 = vector.extract_strided_slice %83 {offsets = [0, 0], sizes = [8, 64], strides = [1, 1]} : vector<8x192xf32> to vector<8x64xf32>
    %89 = arith.mulf %88, %85 : vector<8x64xf32>
    %90 = arith.addf %87, %89 : vector<8x64xf32>
    %91 = vector.extract_strided_slice %83 {offsets = [0, 128], sizes = [8, 64], strides = [1, 1]} : vector<8x192xf32> to vector<8x64xf32>
    %92 = math.tanh %90 : vector<8x64xf32>
    %93 = arith.mulf %91, %92 : vector<8x64xf32>
    %c4_i32 = arith.constant 4 : i32
    %94 = arith.index_cast %c4_i32 : i32 to index
    %c0_22 = arith.constant 0 : index
    %c0_23 = arith.constant 0 : index
    %95 = vector.load %arg2[%94, %c0_22, %c0_23] : memref<8x8x256xf32, #tpu.memory_space<vmem>>, vector<1x8x256xf32>
    %96 = vector.shape_cast %95 : vector<1x8x256xf32> to vector<8x256xf32>
    %97 = arith.truncf %93 : vector<8x64xf32> to vector<8x64xbf16>
    %cst_24 = arith.constant dense<0.000000e+00> : vector<8x256xf32>
    %98 = tpu.matmul %97, %3, %cst_24 {dimension_numbers = #tpu.dot_dimension_numbers<[1], [0], [0], [1], [0, 0, 1, 1], [], []>} : vector<8x64xbf16>, vector<64x256xbf16>, vector<8x256xf32> -> vector<8x256xf32>
    %99 = arith.addf %96, %98 : vector<8x256xf32>
    %100 = vector.extract_strided_slice %99 {offsets = [0, 0], sizes = [8, 192], strides = [1, 1]} : vector<8x256xf32> to vector<8x192xf32>
    %101 = arith.negf %100 : vector<8x192xf32>
    %102 = math.exp %101 : vector<8x192xf32>
    %cst_25 = arith.constant 1.000000e+00 : f32
    %103 = vector.broadcast %cst_25 : f32 to vector<8x192xf32>
    %104 = arith.addf %103, %102 : vector<8x192xf32>
    %105 = arith.divf %103, %104 : vector<8x192xf32>
    %106 = vector.extract_strided_slice %99 {offsets = [0, 192], sizes = [8, 64], strides = [1, 1]} : vector<8x256xf32> to vector<8x64xf32>
    %107 = math.tanh %106 : vector<8x64xf32>
    %108 = vector.extract_strided_slice %105 {offsets = [0, 64], sizes = [8, 64], strides = [1, 1]} : vector<8x192xf32> to vector<8x64xf32>
    %109 = arith.mulf %108, %90 : vector<8x64xf32>
    %110 = vector.extract_strided_slice %105 {offsets = [0, 0], sizes = [8, 64], strides = [1, 1]} : vector<8x192xf32> to vector<8x64xf32>
    %111 = arith.mulf %110, %107 : vector<8x64xf32>
    %112 = arith.addf %109, %111 : vector<8x64xf32>
    %113 = vector.extract_strided_slice %105 {offsets = [0, 128], sizes = [8, 64], strides = [1, 1]} : vector<8x192xf32> to vector<8x64xf32>
    %114 = math.tanh %112 : vector<8x64xf32>
    %115 = arith.mulf %113, %114 : vector<8x64xf32>
    %c5_i32 = arith.constant 5 : i32
    %116 = arith.index_cast %c5_i32 : i32 to index
    %c0_26 = arith.constant 0 : index
    %c0_27 = arith.constant 0 : index
    %117 = vector.load %arg2[%116, %c0_26, %c0_27] : memref<8x8x256xf32, #tpu.memory_space<vmem>>, vector<1x8x256xf32>
    %118 = vector.shape_cast %117 : vector<1x8x256xf32> to vector<8x256xf32>
    %119 = arith.truncf %115 : vector<8x64xf32> to vector<8x64xbf16>
    %cst_28 = arith.constant dense<0.000000e+00> : vector<8x256xf32>
    %120 = tpu.matmul %119, %3, %cst_28 {dimension_numbers = #tpu.dot_dimension_numbers<[1], [0], [0], [1], [0, 0, 1, 1], [], []>} : vector<8x64xbf16>, vector<64x256xbf16>, vector<8x256xf32> -> vector<8x256xf32>
    %121 = arith.addf %118, %120 : vector<8x256xf32>
    %122 = vector.extract_strided_slice %121 {offsets = [0, 0], sizes = [8, 192], strides = [1, 1]} : vector<8x256xf32> to vector<8x192xf32>
    %123 = arith.negf %122 : vector<8x192xf32>
    %124 = math.exp %123 : vector<8x192xf32>
    %cst_29 = arith.constant 1.000000e+00 : f32
    %125 = vector.broadcast %cst_29 : f32 to vector<8x192xf32>
    %126 = arith.addf %125, %124 : vector<8x192xf32>
    %127 = arith.divf %125, %126 : vector<8x192xf32>
    %128 = vector.extract_strided_slice %121 {offsets = [0, 192], sizes = [8, 64], strides = [1, 1]} : vector<8x256xf32> to vector<8x64xf32>
    %129 = math.tanh %128 : vector<8x64xf32>
    %130 = vector.extract_strided_slice %127 {offsets = [0, 64], sizes = [8, 64], strides = [1, 1]} : vector<8x192xf32> to vector<8x64xf32>
    %131 = arith.mulf %130, %112 : vector<8x64xf32>
    %132 = vector.extract_strided_slice %127 {offsets = [0, 0], sizes = [8, 64], strides = [1, 1]} : vector<8x192xf32> to vector<8x64xf32>
    %133 = arith.mulf %132, %129 : vector<8x64xf32>
    %134 = arith.addf %131, %133 : vector<8x64xf32>
    %135 = vector.extract_strided_slice %127 {offsets = [0, 128], sizes = [8, 64], strides = [1, 1]} : vector<8x192xf32> to vector<8x64xf32>
    %136 = math.tanh %134 : vector<8x64xf32>
    %137 = arith.mulf %135, %136 : vector<8x64xf32>
    %c6_i32 = arith.constant 6 : i32
    %138 = arith.index_cast %c6_i32 : i32 to index
    %c0_30 = arith.constant 0 : index
    %c0_31 = arith.constant 0 : index
    %139 = vector.load %arg2[%138, %c0_30, %c0_31] : memref<8x8x256xf32, #tpu.memory_space<vmem>>, vector<1x8x256xf32>
    %140 = vector.shape_cast %139 : vector<1x8x256xf32> to vector<8x256xf32>
    %141 = arith.truncf %137 : vector<8x64xf32> to vector<8x64xbf16>
    %cst_32 = arith.constant dense<0.000000e+00> : vector<8x256xf32>
    %142 = tpu.matmul %141, %3, %cst_32 {dimension_numbers = #tpu.dot_dimension_numbers<[1], [0], [0], [1], [0, 0, 1, 1], [], []>} : vector<8x64xbf16>, vector<64x256xbf16>, vector<8x256xf32> -> vector<8x256xf32>
    %143 = arith.addf %140, %142 : vector<8x256xf32>
    %144 = vector.extract_strided_slice %143 {offsets = [0, 0], sizes = [8, 192], strides = [1, 1]} : vector<8x256xf32> to vector<8x192xf32>
    %145 = arith.negf %144 : vector<8x192xf32>
    %146 = math.exp %145 : vector<8x192xf32>
    %cst_33 = arith.constant 1.000000e+00 : f32
    %147 = vector.broadcast %cst_33 : f32 to vector<8x192xf32>
    %148 = arith.addf %147, %146 : vector<8x192xf32>
    %149 = arith.divf %147, %148 : vector<8x192xf32>
    %150 = vector.extract_strided_slice %143 {offsets = [0, 192], sizes = [8, 64], strides = [1, 1]} : vector<8x256xf32> to vector<8x64xf32>
    %151 = math.tanh %150 : vector<8x64xf32>
    %152 = vector.extract_strided_slice %149 {offsets = [0, 64], sizes = [8, 64], strides = [1, 1]} : vector<8x192xf32> to vector<8x64xf32>
    %153 = arith.mulf %152, %134 : vector<8x64xf32>
    %154 = vector.extract_strided_slice %149 {offsets = [0, 0], sizes = [8, 64], strides = [1, 1]} : vector<8x192xf32> to vector<8x64xf32>
    %155 = arith.mulf %154, %151 : vector<8x64xf32>
    %156 = arith.addf %153, %155 : vector<8x64xf32>
    %157 = vector.extract_strided_slice %149 {offsets = [0, 128], sizes = [8, 64], strides = [1, 1]} : vector<8x192xf32> to vector<8x64xf32>
    %158 = math.tanh %156 : vector<8x64xf32>
    %159 = arith.mulf %157, %158 : vector<8x64xf32>
    %c7_i32 = arith.constant 7 : i32
    %160 = arith.index_cast %c7_i32 : i32 to index
    %c0_34 = arith.constant 0 : index
    %c0_35 = arith.constant 0 : index
    %161 = vector.load %arg2[%160, %c0_34, %c0_35] : memref<8x8x256xf32, #tpu.memory_space<vmem>>, vector<1x8x256xf32>
    %162 = vector.shape_cast %161 : vector<1x8x256xf32> to vector<8x256xf32>
    %163 = arith.truncf %159 : vector<8x64xf32> to vector<8x64xbf16>
    %cst_36 = arith.constant dense<0.000000e+00> : vector<8x256xf32>
    %164 = tpu.matmul %163, %3, %cst_36 {dimension_numbers = #tpu.dot_dimension_numbers<[1], [0], [0], [1], [0, 0, 1, 1], [], []>} : vector<8x64xbf16>, vector<64x256xbf16>, vector<8x256xf32> -> vector<8x256xf32>
    %165 = arith.addf %162, %164 : vector<8x256xf32>
    %166 = vector.extract_strided_slice %165 {offsets = [0, 0], sizes = [8, 192], strides = [1, 1]} : vector<8x256xf32> to vector<8x192xf32>
    %167 = arith.negf %166 : vector<8x192xf32>
    %168 = math.exp %167 : vector<8x192xf32>
    %cst_37 = arith.constant 1.000000e+00 : f32
    %169 = vector.broadcast %cst_37 : f32 to vector<8x192xf32>
    %170 = arith.addf %169, %168 : vector<8x192xf32>
    %171 = arith.divf %169, %170 : vector<8x192xf32>
    %172 = vector.extract_strided_slice %165 {offsets = [0, 192], sizes = [8, 64], strides = [1, 1]} : vector<8x256xf32> to vector<8x64xf32>
    %173 = math.tanh %172 : vector<8x64xf32>
    %174 = vector.extract_strided_slice %171 {offsets = [0, 64], sizes = [8, 64], strides = [1, 1]} : vector<8x192xf32> to vector<8x64xf32>
    %175 = arith.mulf %174, %156 : vector<8x64xf32>
    %176 = vector.extract_strided_slice %171 {offsets = [0, 0], sizes = [8, 64], strides = [1, 1]} : vector<8x192xf32> to vector<8x64xf32>
    %177 = arith.mulf %176, %173 : vector<8x64xf32>
    %178 = arith.addf %175, %177 : vector<8x64xf32>
    %179 = vector.extract_strided_slice %171 {offsets = [0, 128], sizes = [8, 64], strides = [1, 1]} : vector<8x192xf32> to vector<8x64xf32>
    %180 = math.tanh %178 : vector<8x64xf32>
    %181 = arith.mulf %179, %180 : vector<8x64xf32>
    %c8_i32 = arith.constant 8 : i32
    %c0_38 = arith.constant 0 : index
    %c0_39 = arith.constant 0 : index
    %182 = vector.load %arg7[%c0_38, %c0_39] : memref<8x64xf32, #tpu.memory_space<vmem>>, vector<8x64xf32>
    tpu.vector_store %arg7[%c0_38, %c0_39], %181 {strides = array<i32>} : memref<8x64xf32, #tpu.memory_space<vmem>>, vector<8x64xf32>,
    %c0_40 = arith.constant 0 : index
    %c0_41 = arith.constant 0 : index
    %183 = vector.load %arg8[%c0_40, %c0_41] : memref<8x64xf32, #tpu.memory_space<vmem>>, vector<8x64xf32>
    tpu.vector_store %arg8[%c0_40, %c0_41], %178 {strides = array<i32>} : memref<8x64xf32, #tpu.memory_space<vmem>>, vector<8x64xf32>,
    %c0_i32_42 = arith.constant 0 : i32
    %184 = arith.cmpi eq, %arg1, %c0_i32_42 : i32
    %185 = arith.extui %184 : i1 to i32
    %c0_i32_43 = arith.constant 0 : i32
    %186 = arith.cmpi ne, %185, %c0_i32_43 : i32
    scf.if %186 {
      %c0_44 = arith.constant 0 : index
      %c0_45 = arith.constant 0 : index
      %187 = vector.load %arg4[%c0_44, %c0_45] : memref<64x128xf32, #tpu.memory_space<vmem>>, vector<64x128xf32>
      %cst_46 = arith.constant dense<0.000000e+00> : vector<8x128xf32>
      %188 = tpu.matmul %181, %187, %cst_46 {dimension_numbers = #tpu.dot_dimension_numbers<[1], [0], [0], [1], [0, 0, 1, 1], [], []>} : vector<8x64xf32>, vector<64x128xf32>, vector<8x128xf32> -> vector<8x128xf32>
      %c0_47 = arith.constant 0 : index
      %c0_48 = arith.constant 0 : index
      %189 = vector.load %arg5[%c0_47, %c0_48] : memref<1x128xf32, #tpu.memory_space<vmem>>, vector<1x128xf32>
      %190 = vector.broadcast %189 : vector<1x128xf32> to vector<8x128xf32>
      %191 = arith.addf %188, %190 : vector<8x128xf32>
      %c0_49 = arith.constant 0 : index
      %c0_50 = arith.constant 0 : index
      %192 = vector.load %arg6[%c0_49, %c0_50] : memref<8x128xf32, #tpu.memory_space<vmem>>, vector<8x128xf32>
      tpu.vector_store %arg6[%c0_49, %c0_50], %191 {strides = array<i32>} : memref<8x128xf32, #tpu.memory_space<vmem>>, vector<8x128xf32>,
    } else {
    }
    return
  }
  func.func @transform_0(%arg0: i32, %arg1: i32) -> (i32, i32, i32) {
    %c0_i32 = arith.constant 0 : i32
    %c0_i32_0 = arith.constant 0 : i32
    return %arg1, %arg0, %c0_i32 : i32, i32, i32
  }
  func.func @transform_1(%arg0: i32, %arg1: i32) -> (i32, i32) {
    %c0_i32 = arith.constant 0 : i32
    %c0_i32_0 = arith.constant 0 : i32
    %c0_i32_1 = arith.constant 0 : i32
    return %c0_i32, %c0_i32_0 : i32, i32
  }
  func.func @transform_2(%arg0: i32, %arg1: i32) -> (i32, i32) {
    %c0_i32 = arith.constant 0 : i32
    %c0_i32_0 = arith.constant 0 : i32
    %c0_i32_1 = arith.constant 0 : i32
    return %c0_i32, %c0_i32_0 : i32, i32
  }
  func.func @transform_3(%arg0: i32, %arg1: i32) -> (i32, i32) {
    %c0_i32 = arith.constant 0 : i32
    %c0_i32_0 = arith.constant 0 : i32
    %c0_i32_1 = arith.constant 0 : i32
    return %c0_i32, %c0_i32_0 : i32, i32
  }
  func.func @transform_4(%arg0: i32, %arg1: i32) -> (i32, i32) {
    %c0_i32 = arith.constant 0 : i32
    %c0_i32_0 = arith.constant 0 : i32
    return %arg0, %c0_i32 : i32, i32
  }
}

</mosaic_0001>

<bundles_post_ra>
// kernel: tpu_custom_call.1
= control target key start
LH: loop header
LB: loop body
LE: loop exit
PB: predicated region body
PF: predicated region fallthrough
CT: control target
= control target key end

     0   :  { %9 = vsyncpa [#allocation5], 0  ;;  %s1389_s0 = inlined_call_operand.hbm [shape: f32[8,8,256], index: 0, kind: input, shape index: {}]   ;;  %s1390_s1 = inlined_call_operand.hbm [shape: bf16[64,256], index: 1, kind: input, shape index: {}]   ;;  %s1391_s2 = inlined_call_operand.hbm [shape: f32[64,128], index: 2, kind: input, shape index: {}]   ;;  %s1392_s3 = inlined_call_operand.vmem [shape: f32[1,128], index: 3, kind: input, shape index: {}]   ;;  %s1393_s4 = inlined_call_operand.hbm [shape: f32[8,128], index: 4, kind: output, shape index: {}]  }
   0x1   :  { %10 = vsyncpa [#allocation8], 0 }
   0x2   :  { %11 = vsyncpa [#allocation6], 0  ;;  %s1164_s15 = smov [#allocation7]   ;;  %s1070_s19 = scalar_lea.hbm %s1390_s1, 1024 }
   0x3   :  { %s29_s16 = sshll.u32 %s1164_s15, 4  ;;  %p1071_p0 = scmp.ne.s32.totalorder %s1390_s1, %s1070_s19  ;;  %s30_s16 = int_to_ptr.vmem [resolvable:$true] %s29_s16 }
   0x4   :  { %p1074_p1 = scmp.lt.u32.totalorder %s1070_s19, %s1390_s1 }
   0x6   :  { %p1076_p2 = pnand %p1074_p1, %p1071_p0 }
   0x8   :  { %1079 = shalt.err (!%p1076_p2)
}
   0x9   :  { %s1080_s24 = scalar_lea.vmem %s30_s16, 1024  ;;  %p1085_p4 = scmp.lt.s32.totalorder %s30_s16, %s30_s16 }
   0xa   :  { %p1081_p3 = scmp.ne.s32.totalorder %s30_s16, %s1080_s24  ;;  %p1086_p5 = scmp.lt.s32.totalorder %s1080_s24, %s1080_s24 }
   0xc   :  { %p1087_p6 = por %p1086_p5, %p1085_p4 }
   0xe   :  { %p1088_p7 = pnand %p1087_p6, %p1081_p3 }
  0x10   :  { %1091 = shalt.err (!%p1088_p7)
}
  0x11   :  { %s1165_s25 = smov 128   ;;  %s1166_s26 = smov 8  }
  0x12   :  { %35 = dma.hbm_to_vmem [thread:$0]  %s1390_s1, 1024, %s30_s16, [#allocation8], %s1165_s25, %s1165_s25, %s1166_s26  }
  0x13   :  { %s1167_s29 = smov [#allocation4]   ;;  %s1092_s7 = scalar_lea.hbm %s1389_s0, 2048 }
  0x14   :  { %s17_s30 = sshll.u32 %s1167_s29, 4  ;;  %p1093_p8 = scmp.ne.s32.totalorder %s1389_s0, %s1092_s7  ;;  %s18_s30 = int_to_ptr.vmem [resolvable:$true] %s17_s30 }
  0x15   :  { %p1096_p9 = scmp.lt.u32.totalorder %s1092_s7, %s1389_s0 }
  0x17   :  { %p1098_p10 = pnand %p1096_p9, %p1093_p8 }
  0x19   :  { %1101 = shalt.err (!%p1098_p10)
}
  0x1a   :  { %s1102_s12 = scalar_lea.vmem %s18_s30, 2048  ;;  %p1107_p12 = scmp.lt.s32.totalorder %s18_s30, %s18_s30 }
  0x1b   :  { %p1103_p11 = scmp.ne.s32.totalorder %s18_s30, %s1102_s12  ;;  %p1108_p13 = scmp.lt.s32.totalorder %s1102_s12, %s1102_s12 }
  0x1d   :  { %p1109_p0 = por %p1108_p13, %p1107_p12 }
  0x1f   :  { %p1110_p1 = pnand %p1109_p0, %p1103_p11 }
  0x21   :  { %1113 = shalt.err (!%p1110_p1)
}
  0x22   :  { %s1168_s1 = smov 256   ;;  %s1169_s13 = smov 16  }
  0x23   :  { %23 = dma.hbm_to_vmem [thread:$0]  %s1389_s0, 2048, %s18_s30, [#allocation5], %s1168_s1, %s1168_s1, %s1169_s13  }
  0x24   :  { %s1170_s16 = smov [#allocation9]   ;;  %s1114_s20 = scalar_lea.hbm %s1391_s2, 1024 }
  0x25   :  { %s41_s17 = sshll.u32 %s1170_s16, 4  ;;  %p1115_p2 = scmp.ne.s32.totalorder %s1391_s2, %s1114_s20  ;;  %s42_s17 = int_to_ptr.vmem [resolvable:$true] %s41_s17 }
  0x26   :  { %p1118_p3 = scmp.lt.u32.totalorder %s1114_s20, %s1391_s2 }
  0x28   :  { %p1120_p4 = pnand %p1118_p3, %p1115_p2 }
  0x2a   :  { %1123 = shalt.err (!%p1120_p4)
}
  0x2b   :  { %s1124_s27 = scalar_lea.vmem %s42_s17, 1024  ;;  %p1129_p6 = scmp.lt.s32.totalorder %s42_s17, %s42_s17 }
  0x2c   :  { %p1125_p5 = scmp.ne.s32.totalorder %s42_s17, %s1124_s27  ;;  %p1130_p7 = scmp.lt.s32.totalorder %s1124_s27, %s1124_s27 }
  0x2e   :  { %p1131_p8 = por %p1130_p7, %p1129_p6 }
  0x30   :  { %p1132_p9 = pnand %p1131_p8, %p1125_p5 }
  0x32   :  { %1135 = shalt.err (!%p1132_p9)
}
  0x33   :  { %47 = dma.hbm_to_vmem [thread:$0]  %s1391_s2, 1024, %s42_s17, [#allocation8], %s1165_s25, %s1165_s25, %s1166_s26  }
  0x34   :  { %1158 = dma.done.wait [#allocation5], 2048  }
  0x35   :  { %1159 = vsyncadd [#allocation5], 4294965248 }
  0x36   :  { %1160 = dma.done.wait [#allocation8], 2048  }
  0x37   :  { %1161 = vsyncadd [#allocation8], 4294965248  ;;  %vm64_vm0 = vcmask 523264   ;;  %v1171_v0 = vmov 0   ;;  %v1172_v1 = vmov 0.0   ;;  %v78_v12 = vld [vmem:[#allocation4 + $0x8] sm:$0xff] }
  0x38   :  { %156 = vmatprep.mubr.bf16.mxu0 %v1171_v0  ;;  %65 = vst.msk [vmem:[#allocation2] sm:$0xff] %vm64_vm0, %v1172_v1  ;;  %66 = vst.msk [vmem:[#allocation3] sm:$0xff] %vm64_vm0, %v1172_v1  ;;  %240 = vmatprep.mubr.bf16.mxu1 %v1171_v0  ;;  %v1250_v2 = vld [vmem:[#allocation7 + $0x4] ss:$8 sps:$4 sm:$0xff]   ;;  %v1252_v3 = vld [vmem:[#allocation7] ss:$8 sps:$4 sm:$0xff]  }
  0x39   :  { %124 = vmatprep.subr.bf16.mxu0 %v1250_v2  ;;  %v1255_v4 = vld [vmem:[#allocation7 + $0x14] ss:$8 sps:$4 sm:$0xff]   ;;  %208 = vmatprep.subr.bf16.mxu1 %v1250_v2  ;;  %v1259_v5 = vld [vmem:[#allocation7 + $0x10] ss:$8 sps:$4 sm:$0xff]   ;;  %v1263_v6 = vld [vmem:[#allocation7 + $0x24] ss:$8 sps:$4 sm:$0xff]  }
  0x3a   :  { %125 = vmatpush1.bf16.msra.mxu0 %v1252_v3  ;;  %209 = vmatpush1.bf16.msra.mxu1 %v1252_v3  ;;  %v1267_v7 = vld [vmem:[#allocation7 + $0x20] ss:$8 sps:$4 sm:$0xff]   ;;  %v1271_v8 = vld [vmem:[#allocation7 + $0x34] ss:$8 sps:$4 sm:$0xff]   ;;  %v1275_v9 = vld [vmem:[#allocation7 + $0x30] ss:$8 sps:$4 sm:$0xff]  }
  0x3b   :  { %126 = vmatprep.subr.bf16.mxu0 %v1255_v4  ;;  %210 = vmatprep.subr.bf16.mxu1 %v1255_v4  ;;  %s1173_s2 = smov 64   ;;  %v77_v20 = vld [vmem:[#allocation4] sm:$0xff]  ;;  %v203_v40 = vld [vmem:[#allocation4 + $0x18] sm:$0xff]  ;;  %v202_v47 = vld [vmem:[#allocation4 + $0x10] sm:$0xff]  ;;  %vm1175_vm1 = vmmov 0   ;;  %s1176_s29 = smov [#allocation10]  }
  0x3c   :  { %s865_s30 = sshll.u32 %s1176_s29, 4  ;;  %s866_s30 = int_to_ptr.vmem [resolvable:$true] %s865_s30 }
  0x3d   :  { %s1136_s5 = scalar_lea.vmem %s866_s30, 128  ;;  %p1141_p11 = scmp.lt.s32.totalorder %s866_s30, %s866_s30 }
  0x3e   :  { %127 = vmatpush1.bf16.msra.mxu0 %v1259_v5  ;;  %211 = vmatpush1.bf16.msra.mxu1 %v1259_v5  ;;  %p1137_p10 = scmp.ne.s32.totalorder %s866_s30, %s1136_s5  ;;  %p1142_p12 = scmp.lt.s32.totalorder %s1136_s5, %s1136_s5 }
  0x3f   :  { %128 = vmatprep.subr.bf16.mxu0 %v1263_v6  ;;  %212 = vmatprep.subr.bf16.mxu1 %v1263_v6  ;;  %v75_v10 = vld [vmem:[#allocation2] sm:$0xff]  ;;  %v76_v19 = vld [vmem:[#allocation3] sm:$0xff] }
  0x40   :  { %v79_v11 = vpack.c.bf16 %v75_v10, %v75_v10  ;;  %p1143_p13 = por %p1142_p12, %p1141_p11 }
  0x42   :  { %129 = vmatpush1.bf16.msra.mxu0 %v1267_v7  ;;  %213 = vmatpush1.bf16.msra.mxu1 %v1267_v7  ;;  %p1144_p0 = pnand %p1143_p13, %p1137_p10 }
  0x43   :  { %130 = vmatprep.subr.bf16.mxu0 %v1271_v8  ;;  %214 = vmatprep.subr.bf16.mxu1 %v1271_v8 }
  0x46   :  { %131 = vmatpush1.bf16.msra.mxu0 %v1275_v9  ;;  %215 = vmatpush1.bf16.msra.mxu1 %v1275_v9 }
  0x47   :  { %288 = vmatprep.subr.bf16.mxu0 %v1250_v2  ;;  %368 = vmatprep.subr.bf16.mxu1 %v1250_v2 }
  0x49   :  { %883 = vmatmul.mubr.msk.bf16.vlgmr.msra.gmra.mrb[0].mxu0 %vm64_vm0, %v79_v11 }
  0x4a   :  { %289 = vmatpush1.bf16.msra.mxu0 %v1252_v3  ;;  %320 = vmatprep.mubr.bf16.mxu0 %v1171_v0 }
  0x4b   :  { %290 = vmatprep.subr.bf16.mxu0 %v1255_v4 }
  0x4e   :  { %291 = vmatpush1.bf16.msra.mxu0 %v1259_v5 }
  0x4f   :  { %292 = vmatprep.subr.bf16.mxu0 %v1263_v6 }
  0x52   :  { %293 = vmatpush1.bf16.msra.mxu0 %v1267_v7 }
  0x53   :  { %294 = vmatprep.subr.bf16.mxu0 %v1271_v8 }
  0x56   :  { %295 = vmatpush1.bf16.msra.mxu0 %v1275_v9 }
  0x57   :  { %448 = vmatprep.subr.bf16.mxu0 %v1250_v2 }
 0x11c   :  { %v158_v13 = vpop.f32.mrb[0].mxu0 }
 0x11d   :  { %v160_v14 = vpop.f32.mrb[1].mxu0  ;;  %v165_v21 = vadd.f32 %v158_v13, %v77_v20 }
 0x11e   :  { %v166_v15 = vadd.f32 %v160_v14, %v78_v12  ;;  %v162_v16 = vpop.f32.mrb[2].mxu0  ;;  %v283_v12 = vld [vmem:[#allocation4 + $0x28] sm:$0xff] }
 0x11f   :  { %v163_v17 = vpop.f32.mrb[3].mxu0  ;;  %v884_v22 = vmul.f32 -1.442695, %v165_v21 }
 0x120   :  { %974 = vtanh.f32 %v166_v15  ;;  %v885_v33 = vmul.f32 -1.442695, %v166_v15 }
 0x121   :  { %976 = vpow2.f32 %v884_v22 }
 0x12a   :  { %v975_v18 = vpop.eup %974 }
 0x12b   :  { %186 = vrot.lane.b32.xlu0 %v975_v18, %s1173_s2  ;;  %v977_v23 = vpop.eup %976 }
 0x12c   :  { %v173_v24 = vadd.f32 1.0, %v977_v23 }
 0x12e   :  { %978 = vrcp.f32 %v173_v24 }
 0x12f   :  { %181 = vrot.lane.b32.xlu0 %v76_v19, %s1173_s2  ;;  %v282_v19 = vld [vmem:[#allocation4 + $0x20] sm:$0xff] }
 0x138   :  { %v979_v25 = vpop.eup %978 }
 0x19d   :  { %v187_v26 = vpop.permute.xlu0 %186 }
 0x19e   :  { %v189_v27 = vmul.f32 %v979_v25, %v187_v26 }
 0x1a0   :  { %191 = vrot.lane.b32.xlu1 %v189_v27, %s1173_s2 }
 0x1a1   :  { %v182_v28 = vpop.permute.xlu0 %181 }
 0x1a2   :  { %v184_v29 = vmul.f32 %v979_v25, %v182_v28 }
 0x212   :  { %v192_v30 = vpop.permute.xlu1 %191 }
 0x213   :  { %v194_v31 = vadd.f32 %v192_v30, %v184_v29 }
 0x215   :  { %980 = vtanh.f32 %v194_v31 }
 0x216   :  { %982 = vpow2.f32 %v885_v33 }
 0x21f   :  { %v981_v32 = vpop.eup %980 }
 0x220   :  { %197 = vrot.lane.b32.xlu1 %v981_v32, %s1173_s2  ;;  %v983_v34 = vpop.eup %982 }
 0x221   :  { %v174_v35 = vadd.f32 1.0, %v983_v34 }
 0x223   :  { %984 = vrcp.f32 %v174_v35 }
 0x22d   :  { %v985_v36 = vpop.eup %984 }
 0x292   :  { %v198_v37 = vpop.permute.xlu1 %197 }
 0x293   :  { %v200_v38 = vmul.f32 %v985_v36, %v198_v37 }
 0x295   :  { %v204_v39 = vpack.c.bf16 %v200_v38, %v200_v38  ;;  %v363_v38 = vld [vmem:[#allocation4 + $0x38] sm:$0xff] }
 0x297   :  { %886 = vmatmul.mubr.msk.bf16.vlgmr.msra.gmra.mrb[0].mxu1 %vm64_vm0, %v204_v39 }
 0x298   :  { %369 = vmatpush1.bf16.msra.mxu1 %v1252_v3  ;;  %400 = vmatprep.mubr.bf16.mxu1 %v1171_v0 }
 0x299   :  { %370 = vmatprep.subr.bf16.mxu1 %v1255_v4 }
 0x29c   :  { %371 = vmatpush1.bf16.msra.mxu1 %v1259_v5 }
 0x29d   :  { %372 = vmatprep.subr.bf16.mxu1 %v1263_v6 }
 0x2a0   :  { %373 = vmatpush1.bf16.msra.mxu1 %v1267_v7 }
 0x2a1   :  { %374 = vmatprep.subr.bf16.mxu1 %v1271_v8 }
 0x2a4   :  { %375 = vmatpush1.bf16.msra.mxu1 %v1275_v9 }
 0x2a5   :  { %528 = vmatprep.subr.bf16.mxu1 %v1250_v2 }
 0x36a   :  { %v242_v41 = vpop.f32.mrb[0].mxu1 }
 0x36b   :  { %v244_v42 = vpop.f32.mrb[1].mxu1  ;;  %v249_v48 = vadd.f32 %v242_v41, %v202_v47 }
 0x36c   :  { %v250_v43 = vadd.f32 %v244_v42, %v203_v40  ;;  %v246_v44 = vpop.f32.mrb[2].mxu1 }
 0x36d   :  { %v247_v45 = vpop.f32.mrb[3].mxu1  ;;  %v887_v49 = vmul.f32 -1.442695, %v249_v48 }
 0x36e   :  { %986 = vtanh.f32 %v250_v43  ;;  %v888_v59 = vmul.f32 -1.442695, %v250_v43  ;;  %v362_v45 = vld [vmem:[#allocation4 + $0x30] sm:$0xff] }
 0x36f   :  { %988 = vpow2.f32 %v887_v49 }
 0x378   :  { %v987_v46 = vpop.eup %986 }
 0x379   :  { %266 = vrot.lane.b32.xlu0 %v987_v46, %s1173_s2  ;;  %v989_v50 = vpop.eup %988 }
 0x37a   :  { %v257_v51 = vadd.f32 1.0, %v989_v50 }
 0x37c   :  { %990 = vrcp.f32 %v257_v51 }
 0x386   :  { %v991_v52 = vpop.eup %990 }
 0x387   :  { %v264_v55 = vmul.f32 %v991_v52, %v194_v31 }
 0x3eb   :  { %v267_v53 = vpop.permute.xlu0 %266 }
 0x3ec   :  { %v269_v54 = vmul.f32 %v991_v52, %v267_v53 }
 0x3ee   :  { %271 = vrot.lane.b32.xlu1 %v269_v54, %s1173_s2 }
 0x460   :  { %v272_v56 = vpop.permute.xlu1 %271 }
 0x461   :  { %v274_v57 = vadd.f32 %v272_v56, %v264_v55 }
 0x463   :  { %992 = vtanh.f32 %v274_v57 }
 0x464   :  { %994 = vpow2.f32 %v888_v59 }
 0x46d   :  { %v993_v58 = vpop.eup %992 }
 0x46e   :  { %277 = vrot.lane.b32.xlu0 %v993_v58, %s1173_s2  ;;  %v995_v60 = vpop.eup %994 }
 0x46f   :  { %v258_v61 = vadd.f32 1.0, %v995_v60 }
 0x471   :  { %996 = vrcp.f32 %v258_v61 }
 0x47b   :  { %v997_v62 = vpop.eup %996 }
 0x4e0   :  { %v278_v63 = vpop.permute.xlu0 %277 }
 0x4e1   :  { %v280_v10 = vmul.f32 %v997_v62, %v278_v63  ;;  %v443_v63 = vld [vmem:[#allocation4 + $0x48] sm:$0xff] }
 0x4e3   :  { %v284_v11 = vpack.c.bf16 %v280_v10, %v280_v10 }
 0x4e5   :  { %889 = vmatmul.mubr.msk.bf16.vlgmr.msra.gmra.mrb[4].mxu0 %vm64_vm0, %v284_v11 }
 0x4e6   :  { %449 = vmatpush1.bf16.msra.mxu0 %v1252_v3  ;;  %480 = vmatprep.mubr.bf16.mxu0 %v1171_v0 }
 0x4e7   :  { %450 = vmatprep.subr.bf16.mxu0 %v1255_v4 }
 0x4ea   :  { %451 = vmatpush1.bf16.msra.mxu0 %v1259_v5 }
 0x4eb   :  { %452 = vmatprep.subr.bf16.mxu0 %v1263_v6 }
 0x4ee   :  { %453 = vmatpush1.bf16.msra.mxu0 %v1267_v7 }
 0x4ef   :  { %454 = vmatprep.subr.bf16.mxu0 %v1271_v8 }
 0x4f2   :  { %455 = vmatpush1.bf16.msra.mxu0 %v1275_v9 }
 0x4f3   :  { %608 = vmatprep.subr.bf16.mxu0 %v1250_v2 }
 0x5b8   :  { %v322_v13 = vpop.f32.mrb[4].mxu0 }
 0x5b9   :  { %v324_v14 = vpop.f32.mrb[5].mxu0  ;;  %v329_v20 = vadd.f32 %v322_v13, %v282_v19 }
 0x5ba   :  { %v330_v15 = vadd.f32 %v324_v14, %v283_v12  ;;  %v326_v16 = vpop.f32.mrb[6].mxu0 }
 0x5bb   :  { %v327_v17 = vpop.f32.mrb[7].mxu0  ;;  %v890_v21 = vmul.f32 -1.442695, %v329_v20  ;;  %v442_v16 = vld [vmem:[#allocation4 + $0x40] sm:$0xff] }
 0x5bc   :  { %998 = vtanh.f32 %v330_v15  ;;  %v891_v31 = vmul.f32 -1.442695, %v330_v15 }
 0x5bd   :  { %1000 = vpow2.f32 %v890_v21 }
 0x5c6   :  { %v999_v18 = vpop.eup %998 }
 0x5c7   :  { %346 = vrot.lane.b32.xlu1 %v999_v18, %s1173_s2  ;;  %v1001_v22 = vpop.eup %1000 }
 0x5c8   :  { %v337_v23 = vadd.f32 1.0, %v1001_v22 }
 0x5ca   :  { %1002 = vrcp.f32 %v337_v23 }
 0x5d4   :  { %v1003_v24 = vpop.eup %1002 }
 0x5d5   :  { %v344_v27 = vmul.f32 %v1003_v24, %v274_v57 }
 0x639   :  { %v347_v25 = vpop.permute.xlu1 %346 }
 0x63a   :  { %v349_v26 = vmul.f32 %v1003_v24, %v347_v25 }
 0x63c   :  { %351 = vrot.lane.b32.xlu0 %v349_v26, %s1173_s2 }
 0x6ae   :  { %v352_v28 = vpop.permute.xlu0 %351 }
 0x6af   :  { %v354_v29 = vadd.f32 %v352_v28, %v344_v27 }
 0x6b1   :  { %1004 = vtanh.f32 %v354_v29 }
 0x6b2   :  { %1006 = vpow2.f32 %v891_v31 }
 0x6bb   :  { %v1005_v30 = vpop.eup %1004 }
 0x6bc   :  { %357 = vrot.lane.b32.xlu1 %v1005_v30, %s1173_s2  ;;  %v1007_v32 = vpop.eup %1006 }
 0x6bd   :  { %v338_v33 = vadd.f32 1.0, %v1007_v32 }
 0x6bf   :  { %1008 = vrcp.f32 %v338_v33 }
 0x6c9   :  { %v1009_v34 = vpop.eup %1008 }
 0x72e   :  { %v358_v35 = vpop.permute.xlu1 %357 }
 0x72f   :  { %v360_v36 = vmul.f32 %v1009_v34, %v358_v35  ;;  %v523_v35 = vld [vmem:[#allocation4 + $0x58] sm:$0xff] }
 0x731   :  { %v364_v37 = vpack.c.bf16 %v360_v36, %v360_v36 }
 0x733   :  { %892 = vmatmul.mubr.msk.bf16.vlgmr.msra.gmra.mrb[4].mxu1 %vm64_vm0, %v364_v37 }
 0x734   :  { %529 = vmatpush1.bf16.msra.mxu1 %v1252_v3  ;;  %560 = vmatprep.mubr.bf16.mxu1 %v1171_v0 }
 0x735   :  { %530 = vmatprep.subr.bf16.mxu1 %v1255_v4 }
 0x738   :  { %531 = vmatpush1.bf16.msra.mxu1 %v1259_v5 }
 0x739   :  { %532 = vmatprep.subr.bf16.mxu1 %v1263_v6 }
 0x73c   :  { %533 = vmatpush1.bf16.msra.mxu1 %v1267_v7 }
 0x73d   :  { %534 = vmatprep.subr.bf16.mxu1 %v1271_v8 }
 0x740   :  { %535 = vmatpush1.bf16.msra.mxu1 %v1275_v9 }
 0x741   :  { %688 = vmatprep.subr.bf16.mxu1 %v1250_v2 }
 0x806   :  { %v402_v39 = vpop.f32.mrb[4].mxu1 }
 0x807   :  { %v404_v40 = vpop.f32.mrb[5].mxu1  ;;  %v409_v46 = vadd.f32 %v402_v39, %v362_v45 }
 0x808   :  { %v410_v41 = vadd.f32 %v404_v40, %v363_v38  ;;  %v406_v42 = vpop.f32.mrb[6].mxu1 }
 0x809   :  { %v407_v43 = vpop.f32.mrb[7].mxu1  ;;  %v893_v47 = vmul.f32 -1.442695, %v409_v46 }
 0x80a   :  { %1010 = vtanh.f32 %v410_v41  ;;  %v894_v56 = vmul.f32 -1.442695, %v410_v41 }
 0x80b   :  { %1012 = vpow2.f32 %v893_v47 }
 0x814   :  { %v1011_v44 = vpop.eup %1010 }
 0x815   :  { %426 = vrot.lane.b32.xlu0 %v1011_v44, %s1173_s2  ;;  %v1013_v48 = vpop.eup %1012 }
 0x816   :  { %v417_v49 = vadd.f32 1.0, %v1013_v48 }
 0x818   :  { %1014 = vrcp.f32 %v417_v49 }
 0x822   :  { %v1015_v50 = vpop.eup %1014 }
 0x823   :  { %v424_v52 = vmul.f32 %v1015_v50, %v354_v29 }
 0x887   :  { %v427_v51 = vpop.permute.xlu0 %426 }
 0x888   :  { %v429_v2 = vmul.f32 %v1015_v50, %v427_v51 }
 0x88a   :  { %431 = vrot.lane.b32.xlu1 %v429_v2, %s1173_s2 }
 0x8fc   :  { %v432_v53 = vpop.permute.xlu1 %431 }
 0x8fd   :  { %v434_v54 = vadd.f32 %v432_v53, %v424_v52  ;;  %v603_v52 = vld [vmem:[#allocation4 + $0x68] sm:$0xff] }
 0x8ff   :  { %1016 = vtanh.f32 %v434_v54 }
 0x900   :  { %1018 = vpow2.f32 %v894_v56 }
 0x909   :  { %v1017_v55 = vpop.eup %1016 }
 0x90a   :  { %437 = vrot.lane.b32.xlu0 %v1017_v55, %s1173_s2  ;;  %v1019_v57 = vpop.eup %1018 }
 0x90b   :  { %v418_v58 = vadd.f32 1.0, %v1019_v57 }
 0x90d   :  { %1020 = vrcp.f32 %v418_v58 }
 0x917   :  { %v1021_v59 = vpop.eup %1020 }
 0x97c   :  { %v438_v60 = vpop.permute.xlu0 %437 }
 0x97d   :  { %v440_v61 = vmul.f32 %v1021_v59, %v438_v60  ;;  %v602_v59 = vld [vmem:[#allocation4 + $0x60] sm:$0xff] }
 0x97f   :  { %v444_v62 = vpack.c.bf16 %v440_v61, %v440_v61 }
 0x981   :  { %895 = vmatmul.mubr.msk.bf16.vlgmr.msra.gmra.mrb[8].mxu0 %vm64_vm0, %v444_v62 }
 0x982   :  { %609 = vmatpush1.bf16.msra.mxu0 %v1252_v3  ;;  %640 = vmatprep.mubr.bf16.mxu0 %v1171_v0 }
 0x983   :  { %610 = vmatprep.subr.bf16.mxu0 %v1255_v4 }
 0x986   :  { %611 = vmatpush1.bf16.msra.mxu0 %v1259_v5 }
 0x987   :  { %612 = vmatprep.subr.bf16.mxu0 %v1263_v6 }
 0x98a   :  { %613 = vmatpush1.bf16.msra.mxu0 %v1267_v7 }
 0x98b   :  { %614 = vmatprep.subr.bf16.mxu0 %v1271_v8 }
 0x98e   :  { %615 = vmatpush1.bf16.msra.mxu0 %v1275_v9 }
 0xa54   :  { %v482_v10 = vpop.f32.mrb[8].mxu0 }
 0xa55   :  { %v484_v11 = vpop.f32.mrb[9].mxu0  ;;  %v489_v17 = vadd.f32 %v482_v10, %v442_v16 }
 0xa56   :  { %v490_v12 = vadd.f32 %v484_v11, %v443_v63  ;;  %v486_v13 = vpop.f32.mrb[10].mxu0 }
 0xa57   :  { %v487_v14 = vpop.f32.mrb[11].mxu0  ;;  %v896_v18 = vmul.f32 -1.442695, %v489_v17 }
 0xa58   :  { %1022 = vtanh.f32 %v490_v12  ;;  %v897_v28 = vmul.f32 -1.442695, %v490_v12 }
 0xa59   :  { %1024 = vpow2.f32 %v896_v18 }
 0xa62   :  { %v1023_v15 = vpop.eup %1022 }
 0xa63   :  { %506 = vrot.lane.b32.xlu1 %v1023_v15, %s1173_s2  ;;  %v1025_v19 = vpop.eup %1024 }
 0xa64   :  { %v497_v20 = vadd.f32 1.0, %v1025_v19 }
 0xa66   :  { %1026 = vrcp.f32 %v497_v20 }
 0xa70   :  { %v1027_v21 = vpop.eup %1026 }
 0xa71   :  { %v504_v24 = vmul.f32 %v1027_v21, %v434_v54 }
 0xad5   :  { %v507_v22 = vpop.permute.xlu1 %506 }
 0xad6   :  { %v509_v23 = vmul.f32 %v1027_v21, %v507_v22 }
 0xad8   :  { %511 = vrot.lane.b32.xlu0 %v509_v23, %s1173_s2 }
 0xb4a   :  { %v512_v25 = vpop.permute.xlu0 %511 }
 0xb4b   :  { %v514_v26 = vadd.f32 %v512_v25, %v504_v24  ;;  %v683_v24 = vld [vmem:[#allocation4 + $0x78] sm:$0xff] }
 0xb4d   :  { %1028 = vtanh.f32 %v514_v26 }
 0xb4e   :  { %1030 = vpow2.f32 %v897_v28 }
 0xb57   :  { %v1029_v27 = vpop.eup %1028 }
 0xb58   :  { %517 = vrot.lane.b32.xlu1 %v1029_v27, %s1173_s2  ;;  %v1031_v29 = vpop.eup %1030 }
 0xb59   :  { %v498_v30 = vadd.f32 1.0, %v1031_v29 }
 0xb5b   :  { %1032 = vrcp.f32 %v498_v30 }
 0xb65   :  { %v1033_v31 = vpop.eup %1032 }
 0xbca   :  { %v518_v32 = vpop.permute.xlu1 %517 }
 0xbcb   :  { %v520_v33 = vmul.f32 %v1033_v31, %v518_v32  ;;  %v682_v31 = vld [vmem:[#allocation4 + $0x70] sm:$0xff] }
 0xbcd   :  { %v524_v34 = vpack.c.bf16 %v520_v33, %v520_v33 }
 0xbcf   :  { %898 = vmatmul.mubr.msk.bf16.vlgmr.msra.gmra.mrb[8].mxu1 %vm64_vm0, %v524_v34 }
 0xbd0   :  { %689 = vmatpush1.bf16.msra.mxu1 %v1252_v3  ;;  %720 = vmatprep.mubr.bf16.mxu1 %v1171_v0 }
 0xbd1   :  { %690 = vmatprep.subr.bf16.mxu1 %v1255_v4  ;;  %v522_v4 = vld [vmem:[#allocation4 + $0x50] sm:$0xff] }
 0xbd4   :  { %691 = vmatpush1.bf16.msra.mxu1 %v1259_v5 }
 0xbd5   :  { %692 = vmatprep.subr.bf16.mxu1 %v1263_v6 }
 0xbd8   :  { %693 = vmatpush1.bf16.msra.mxu1 %v1267_v7 }
 0xbd9   :  { %694 = vmatprep.subr.bf16.mxu1 %v1271_v8 }
 0xbdc   :  { %695 = vmatpush1.bf16.msra.mxu1 %v1275_v9 }
 0xca2   :  { %v562_v36 = vpop.f32.mrb[8].mxu1 }
 0xca3   :  { %v564_v37 = vpop.f32.mrb[9].mxu1  ;;  %v569_v5 = vadd.f32 %v562_v36, %v522_v4 }
 0xca4   :  { %v570_v38 = vadd.f32 %v564_v37, %v523_v35  ;;  %v566_v39 = vpop.f32.mrb[10].mxu1 }
 0xca5   :  { %v567_v3 = vpop.f32.mrb[11].mxu1  ;;  %v899_v40 = vmul.f32 -1.442695, %v569_v5  ;;  %v770_v39 = vld [vmem:[#allocation9] sm:$0xff]  ;;  %v772_v5 = vld [vmem:[#allocation9 + $0x10] sm:$0xff] }
 0xca6   :  { %1034 = vtanh.f32 %v570_v38  ;;  %v900_v46 = vmul.f32 -1.442695, %v570_v38  ;;  %v771_v3 = vld [vmem:[#allocation9 + $0x8] sm:$0xff] }
 0xca7   :  { %1036 = vpow2.f32 %v899_v40  ;;  %v938_v4 = vpack.c.bf16 %v771_v3, %v770_v39  ;;  %v773_v40 = vld [vmem:[#allocation9 + $0x18] sm:$0xff] }
 0xcb0   :  { %v1035_v0 = vpop.eup %1034 }
 0xcb1   :  { %586 = vrot.lane.b32.xlu0 %v1035_v0, %s1173_s2  ;;  %v1037_v6 = vpop.eup %1036  ;;  %v1174_v0 = vmov 0.0|0.0  }
 0xcb2   :  { %v577_v7 = vadd.f32 1.0, %v1037_v6  ;;  %937 = vmatprep.subr.bf16.mxu0 %v1174_v0  ;;  %v941_v6 = vpack.c.bf16 %v773_v40, %v772_v5 }
 0xcb4   :  { %1038 = vrcp.f32 %v577_v7  ;;  %v774_v7 = vld [vmem:[#allocation9 + $0x20] sm:$0xff] }
 0xcbe   :  { %v1039_v8 = vpop.eup %1038 }
 0xcbf   :  { %v584_v42 = vmul.f32 %v1039_v8, %v514_v26 }
 0xd23   :  { %v587_v41 = vpop.permute.xlu0 %586 }
 0xd24   :  { %v589_v9 = vmul.f32 %v1039_v8, %v587_v41  ;;  %v775_v8 = vld [vmem:[#allocation9 + $0x28] sm:$0xff] }
 0xd25   :  { %v944_v41 = vpack.c.bf16 %v775_v8, %v774_v7 }
 0xd26   :  { %591 = vrot.lane.b32.xlu1 %v589_v9, %s1173_s2  ;;  %v776_v9 = vld [vmem:[#allocation9 + $0x30] sm:$0xff] }
 0xd98   :  { %v592_v43 = vpop.permute.xlu1 %591 }
 0xd99   :  { %v594_v44 = vadd.f32 %v592_v43, %v584_v42  ;;  %v777_v42 = vld [vmem:[#allocation9 + $0x38] sm:$0xff] }
 0xd9a   :  { %v947_v43 = vpack.c.bf16 %v777_v42, %v776_v9 }
 0xd9b   :  { %1040 = vtanh.f32 %v594_v44 }
 0xd9c   :  { %1042 = vpow2.f32 %v900_v46 }
 0xda5   :  { %v1041_v45 = vpop.eup %1040 }
 0xda6   :  { %597 = vrot.lane.b32.xlu0 %v1041_v45, %s1173_s2  ;;  %v1043_v47 = vpop.eup %1042 }
 0xda7   :  { %v578_v48 = vadd.f32 1.0, %v1043_v47 }
 0xda9   :  { %1044 = vrcp.f32 %v578_v48 }
 0xdb3   :  { %v1045_v49 = vpop.eup %1044 }
 0xe18   :  { %v598_v50 = vpop.permute.xlu0 %597 }
 0xe19   :  { %v600_v51 = vmul.f32 %v1045_v49, %v598_v50 }
 0xe1b   :  { %v604_v2 = vpack.c.bf16 %v600_v51, %v600_v51 }
 0xe1d   :  { %901 = vmatmul.mubr.msk.bf16.vlgmr.msra.gmra.mrb[12].mxu0 %vm64_vm0, %v604_v2 }
 0xe1e   :  { %939 = vmatpush3.bf16.msra.mxu0 %v938_v4  ;;  %934 = vmatprep.mubr.msk.f32.mxu0 %vm1175_vm1, %v1172_v1  ;;  %v907_v1 = vld [vmem:[%s1392_s3] ss:$0 sm:$0xff] }
 0xe1f   :  { %940 = vmatprep.subr.bf16.mxu0 %v1174_v0 }
 0xe22   :  { %942 = vmatpush3.bf16.msra.mxu0 %v941_v6 }
 0xe23   :  { %943 = vmatprep.subr.bf16.mxu0 %v1174_v0 }
 0xe26   :  { %945 = vmatpush3.bf16.msra.mxu0 %v944_v41 }
 0xe27   :  { %946 = vmatprep.subr.bf16.mxu0 %v1174_v0 }
 0xe2a   :  { %948 = vmatpush3.bf16.msra.mxu0 %v947_v43 }
 0xef0   :  { %v642_v53 = vpop.f32.mrb[12].mxu0 }
 0xef1   :  { %v644_v54 = vpop.f32.mrb[13].mxu0  ;;  %v649_v60 = vadd.f32 %v642_v53, %v602_v59 }
 0xef2   :  { %v650_v55 = vadd.f32 %v644_v54, %v603_v52  ;;  %v646_v56 = vpop.f32.mrb[14].mxu0 }
 0xef3   :  { %v647_v57 = vpop.f32.mrb[15].mxu0  ;;  %v902_v61 = vmul.f32 -1.442695, %v649_v60 }
 0xef4   :  { %1046 = vtanh.f32 %v650_v55  ;;  %v903_v17 = vmul.f32 -1.442695, %v650_v55 }
 0xef5   :  { %1048 = vpow2.f32 %v902_v61 }
 0xefe   :  { %v1047_v58 = vpop.eup %1046 }
 0xeff   :  { %666 = vrot.lane.b32.xlu1 %v1047_v58, %s1173_s2  ;;  %v1049_v62 = vpop.eup %1048 }
 0xf00   :  { %v657_v63 = vadd.f32 1.0, %v1049_v62 }
 0xf02   :  { %1050 = vrcp.f32 %v657_v63 }
 0xf0c   :  { %v1051_v10 = vpop.eup %1050 }
 0xf0d   :  { %v664_v13 = vmul.f32 %v1051_v10, %v594_v44 }
 0xf71   :  { %v667_v11 = vpop.permute.xlu1 %666 }
 0xf72   :  { %v669_v12 = vmul.f32 %v1051_v10, %v667_v11 }
 0xf74   :  { %671 = vrot.lane.b32.xlu0 %v669_v12, %s1173_s2 }
 0xfe6   :  { %v672_v14 = vpop.permute.xlu0 %671 }
 0xfe7   :  { %v674_v15 = vadd.f32 %v672_v14, %v664_v13 }
 0xfe9   :  { %1052 = vtanh.f32 %v674_v15 }
 0xfea   :  { %1054 = vpow2.f32 %v903_v17 }
 0xff3   :  { %v1053_v16 = vpop.eup %1052 }
 0xff4   :  { %677 = vrot.lane.b32.xlu1 %v1053_v16, %s1173_s2  ;;  %v1055_v18 = vpop.eup %1054 }
 0xff5   :  { %v658_v19 = vadd.f32 1.0, %v1055_v18 }
 0xff7   :  { %1056 = vrcp.f32 %v658_v19 }
0x1001   :  { %v1057_v20 = vpop.eup %1056 }
0x1066   :  { %v678_v21 = vpop.permute.xlu1 %677 }
0x1067   :  { %v680_v22 = vmul.f32 %v1057_v20, %v678_v21 }
0x1069   :  { %v684_v23 = vpack.c.bf16 %v680_v22, %v680_v22 }
0x106b   :  { %904 = vmatmul.mubr.msk.bf16.vlgmr.msra.gmra.mrb[12].mxu1 %vm64_vm0, %v684_v23 }
0x113e   :  { %v722_v25 = vpop.f32.mrb[12].mxu1 }
0x113f   :  { %v724_v26 = vpop.f32.mrb[13].mxu1  ;;  %v729_v32 = vadd.f32 %v722_v25, %v682_v31 }
0x1140   :  { %v730_v27 = vadd.f32 %v724_v26, %v683_v24  ;;  %v726_v28 = vpop.f32.mrb[14].mxu1 }
0x1141   :  { %v727_v29 = vpop.f32.mrb[15].mxu1  ;;  %v905_v33 = vmul.f32 -1.442695, %v729_v32 }
0x1142   :  { %1058 = vtanh.f32 %v730_v27  ;;  %v906_v48 = vmul.f32 -1.442695, %v730_v27 }
0x1143   :  { %1060 = vpow2.f32 %v905_v33 }
0x114c   :  { %v1059_v30 = vpop.eup %1058 }
0x114d   :  { %746 = vrot.lane.b32.xlu0 %v1059_v30, %s1173_s2  ;;  %v1061_v34 = vpop.eup %1060 }
0x114e   :  { %v737_v35 = vadd.f32 1.0, %v1061_v34 }
0x1150   :  { %1062 = vrcp.f32 %v737_v35 }
0x115a   :  { %v1063_v36 = vpop.eup %1062 }
0x115b   :  { %v744_v44 = vmul.f32 %v1063_v36, %v674_v15 }
0x11bf   :  { %v747_v37 = vpop.permute.xlu0 %746 }
0x11c0   :  { %v749_v38 = vmul.f32 %v1063_v36, %v747_v37 }
0x11c2   :  { %751 = vrot.lane.b32.xlu1 %v749_v38, %s1173_s2 }
0x1234   :  { %v752_v45 = vpop.permute.xlu1 %751 }
0x1235   :  { %v754_v46 = vadd.f32 %v752_v45, %v744_v44 }
0x1237   :  { %1064 = vtanh.f32 %v754_v46  ;;  %763 = vrot.lane.b32.xlu1 %v754_v46, %s1173_s2 }
0x1238   :  { %1066 = vpow2.f32 %v906_v48 }
0x1241   :  { %v1065_v47 = vpop.eup %1064 }
0x1242   :  { %757 = vrot.lane.b32.xlu0 %v1065_v47, %s1173_s2  ;;  %v1067_v49 = vpop.eup %1066 }
0x1243   :  { %v738_v50 = vadd.f32 1.0, %v1067_v49 }
0x1245   :  { %1068 = vrcp.f32 %v738_v50 }
0x124f   :  { %v1069_v2 = vpop.eup %1068 }
0x12a9   :  { %v764_v51 = vpop.permute.xlu1 %763 }
0x12aa   :  { %766 = vst.msk [vmem:[#allocation3] sm:$0xff] %vm64_vm0, %v764_v51 }
0x12b4   :  { %v758_v52 = vpop.permute.xlu0 %757 }
0x12b5   :  { %v760_v53 = vmul.f32 %v1069_v2, %v758_v52 }
0x12b7   :  { %761 = vst.msk [vmem:[#allocation2] sm:$0xff] %vm64_vm0, %v760_v53  ;;  %935 = vmatmul.mubr.msk.f32.vlgmr.msra.gmra.mrb[16].mxu0 %vm64_vm0, %v760_v53 }
0x138a   :  { %v854_v54 = vpop.f32.mrb[16].mxu0 }
0x138b   :  { %v855_v55 = vadd.f32 %v907_v1, %v854_v54  ;;  %v936_v56 = vpop.f32.mrb[17].mxu0 }
0x138d   :  { %858 = vst [vmem:[#allocation10] sm:$0xff] %v855_v55 }
0x138e   :  { %1147 = shalt.err (!%p1144_p0)
}
0x138f   :  { %s1148_s8 = scalar_lea.hbm %s1393_s4, 128 }
0x1390   :  { %p1149_p1 = scmp.ne.s32.totalorder %s1393_s4, %s1148_s8  ;;  %p1152_p2 = scmp.lt.u32.totalorder %s1148_s8, %s1393_s4 }
0x1392   :  { %p1154_p3 = pnand %p1152_p2, %p1149_p1 }
0x1394   :  { %1157 = shalt.err (!%p1154_p3)
}
0x1395   :  { %868 = dma.vmem_to_hbm [thread:$0]  %s866_s30, 128, %s1393_s4, [#allocation6]  }
0x1396   :  { %1162 = dma.done.wait [#allocation6], 128  }
0x1397   :  { %1163 = vsyncadd [#allocation6], 4294967168 }
0x1398   :  { %872 = vsyncpa [#allocation5], 1 }
0x1399   :  { %873 = vsyncpa [#allocation8], 1 }
0x139a   :  { %874 = vsyncpa [#allocation6], 1 }

</bundles_post_ra>
